<compile_context>
chip_gen: v6e
topology: v6e:2x2x1
jax: 0.10.0
libtpu: 0.0.40
codegen_flags: <defaults>
</compile_context>

<pallas_src>
import functools

import jax
import jax.numpy as jnp
from jax.experimental import pallas as pl
from jax.experimental.pallas import tpu as pltpu

_LANE = 128
_SUBLANE = 8


def _round_up(x, m):
    return (x + m - 1) // m * m


def _fused_fcnet_kernel(x_ref, *refs, num_layers, compute_dtype):
    """Whole FCNet on one row tile: chained (h @ W + b) -> ReLU, all in VMEM.

    x_ref: (tm, d0_pad) f32 row tile.
    refs:  (w_1, b_1, ..., w_L, b_L, o_ref)
           w_l: (d_in_pad, d_out_pad) pre-scaled, pre-transposed, pre-cast
           b_l: (1, d_out_pad) f32
    """
    o_ref = refs[2 * num_layers]
    h = x_ref[...]                                       # f32, lane-dense
    for l in range(num_layers):
        w_ref = refs[2 * l]
        b_ref = refs[2 * l + 1]
        acc = jnp.dot(h.astype(compute_dtype), w_ref[...],
                      preferred_element_type=jnp.float32)   # MXU, f32 accumulate
        h = jnp.maximum(acc + b_ref[...], 0.0)              # bias + ReLU in f32
    o_ref[...] = h.astype(o_ref.dtype)                      # unmasked 128-wide store


def prepare_fcnet_params(params, *, compute_dtype=jnp.float32):
    """One-time (per parameter update) transform of raw weight_norm params.

    Folds g/||V||_F into V (f32), transposes to (d_in, d_out) so the MXU sees a
    (K, N) RHS with N on lanes, zero-pads every feature dim to a multiple of 128
    (lane-dense vregs + unmasked stores), then casts to the MXU compute dtype.
    Keeping this out of the per-forward path removes the extra tiny XLA kernels
    that dominate latency at small batch.
    """
    prepared = []
    for v, g, b in params:
        d_out, d_in = v.shape
        w = (g / jnp.linalg.norm(v)) * v                 # weight_norm(dim=None), f32
        w_t = w.T                                        # (d_in, d_out) = (K, N)
        di_p = _round_up(d_in, _LANE)
        do_p = _round_up(d_out, _LANE)
        w_t = jnp.pad(w_t, ((0, di_p - d_in), (0, do_p - d_out)))
        b_p = jnp.pad(b.reshape(1, -1), ((0, 0), (0, do_p - d_out)))
        prepared.append((w_t.astype(compute_dtype), b_p.astype(jnp.float32)))
    return tuple(prepared)


@functools.partial(jax.jit, static_argnames=("out_dim", "compute_dtype", "tm"))
def fcnet_forward_prepared(x, prepared, *, out_dim, compute_dtype=jnp.float32,
                           tm=None):
    """Fused FCNet forward on prepared params.  x: (N, d0)."""
    n, d_in = x.shape
    num_layers = len(prepared)
    d_in_pad = prepared[0][0].shape[0]
    d_out_pad = prepared[-1][0].shape[1]

    # Row tiling: big tiles amortize per-step overhead; cap at half the padded
    # batch so grid >= 2 and the "parallel" axis can shard across both v7x
    # TensorCores; cap at 1024 rows so the x/out tiles stay tiny in VMEM.
    if tm is None:
        n8 = _round_up(n, _SUBLANE)
        if n8 <= _SUBLANE:
            tm = _SUBLANE
        else:
            tm = min(1024, _round_up(n8 // 2, _SUBLANE))
    tm = max(_SUBLANE, _round_up(tm, _SUBLANE))

    n_pad = _round_up(n, tm)
    # Zero-pad rows to the tile and features to the padded input width.  Padded
    # rows run through bias+ReLU (garbage values) and are sliced off below --
    # wasted work only, never wrong results.
    x_p = jnp.pad(x, ((0, n_pad - n), (0, d_in_pad - d_in)))

    in_specs = [pl.BlockSpec((tm, d_in_pad), lambda i: (i, 0))]   # row tile of x
    operands = [x_p]
    for w, b in prepared:
        in_specs.append(pl.BlockSpec(w.shape, lambda i: (0, 0)))  # resident weight
        in_specs.append(pl.BlockSpec(b.shape, lambda i: (0, 0)))  # resident bias
        operands.extend([w, b])
    # NOTE: at these dims all weights fit VMEM trivially; if dims grow on v7x,
    # single-buffer the constant weight blocks and set an explicit
    # vmem_limit_bytes in CompilerParams.

    kernel = functools.partial(
        _fused_fcnet_kernel, num_layers=num_layers, compute_dtype=compute_dtype)

    out = pl.pallas_call(
        kernel,
        out_shape=jax.ShapeDtypeStruct((n_pad, d_out_pad), x.dtype),
        grid_spec=pltpu.PrefetchScalarGridSpec(
            num_scalar_prefetch=0,
            grid=(n_pad // tm,),
            in_specs=in_specs,
            out_specs=pl.BlockSpec((tm, d_out_pad), lambda i: (i, 0)),
        ),
        compiler_params=pltpu.CompilerParams(
            dimension_semantics=("parallel",)),
    )(*operands)
    return out[:n, :out_dim]


def fcnet_forward(x, params, *, compute_dtype=jnp.float32, tm=None):
    """Convenience wrapper: prepare params then run the fused kernel."""
    prepared = prepare_fcnet_params(params, compute_dtype=compute_dtype)
    out_dim = params[-1][0].shape[0]
    return fcnet_forward_prepared(
        x, prepared, out_dim=out_dim, compute_dtype=compute_dtype, tm=tm)


def init_fcnet_params(key, dims):
    """Deterministic parameter init matching FCNet(dims) shapes.

    Each layer holds weight_norm params: v (out_dim, in_dim), scalar g,
    bias (out_dim,).
    """
    params = []
    for i in range(len(dims) - 1):
        in_dim, out_dim = dims[i], dims[i + 1]
        key, kv, kb, kg = jax.random.split(key, 4)
        bound = 1.0 / jnp.sqrt(in_dim)
        v = jax.random.uniform(kv, (out_dim, in_dim), jnp.float32, -bound, bound)
        b = jax.random.uniform(kb, (out_dim,), jnp.float32, -bound, bound)
        # PyTorch initializes g = ||v||_F; perturb slightly so scaling is exercised.
        g = jnp.linalg.norm(v) * (1.0 + 0.1 * jax.random.uniform(kg, ()))
        params.append((v, g, b))
    return params


def fcnet_reference(x, params):
    """Plain-JAX reference mirroring the PyTorch forward."""
    y = x
    for v, g, b in params:
        w_eff = g * v / jnp.linalg.norm(v)      # (out, in)
        y = jnp.maximum(y @ w_eff.T + b, 0.0)
    return y


# TODO(synk): training-mode Dropout (dropout > 0) is not implemented; the module
# is evaluated with dropout=0 (identity), matching eval-mode semantics.

if __name__ == "__main__":
    key = jax.random.PRNGKey(0)
    dims = (32, 64, 32)          # FCNet(dims=[32, 64, 32], act='ReLU', dropout=0)
    batch = 16

    kx, kp = jax.random.split(key)
    x = jax.random.normal(kx, (batch, dims[0]), jnp.float32)
    params = tuple(init_fcnet_params(kp, dims))

    ref = fcnet_reference(x, params)

    # f32 MXU path (default; best on v5e) — params prepared once, reused per call.
    prepared = prepare_fcnet_params(params)
    out = jax.block_until_ready(
        fcnet_forward_prepared(x, prepared, out_dim=dims[-1]))
    assert out.shape == (batch, dims[-1])
    assert jnp.allclose(out, ref, atol=1e-5, rtol=1e-5), "f32 mismatch vs reference"

    # bf16 MXU inputs / f32 accumulation (v6e/v7x fast path); weights pre-cast.
    prepared_bf16 = prepare_fcnet_params(params, compute_dtype=jnp.bfloat16)
    out_bf16 = jax.block_until_ready(
        fcnet_forward_prepared(x, prepared_bf16, out_dim=dims[-1],
                               compute_dtype=jnp.bfloat16))
    assert jnp.allclose(out_bf16, ref, atol=5e-2, rtol=5e-2), "bf16 mismatch"

    # Convenience one-shot wrapper also works.
    out2 = jax.block_until_ready(fcnet_forward(x, params))
    assert jnp.allclose(out2, ref, atol=1e-5, rtol=1e-5)

    print("KERNEL_OK")
</pallas_src>

<mosaic_0001>
module attributes {stable_mosaic.version = 11 : i64} {
  func.func @_fused_fcnet_kernel(%arg0: i32, %arg1: memref<8x128xf32, #tpu.memory_space<vmem>>, %arg2: memref<128x128xf32, #tpu.memory_space<vmem>>, %arg3: memref<1x128xf32, #tpu.memory_space<vmem>>, %arg4: memref<128x128xf32, #tpu.memory_space<vmem>>, %arg5: memref<1x128xf32, #tpu.memory_space<vmem>>, %arg6: memref<8x128xf32, #tpu.memory_space<vmem>>) attributes {dimension_semantics = [#tpu.dimension_semantics<parallel>], iteration_bounds = array<i64: 2>, scalar_prefetch = 0 : i64, scratch_operands = 0 : i64, tpu.core_type = #tpu.core_type<tc>, window_params = [{transform_indices = @transform_0, window_bounds = array<i64: 8, 128>}, {pipeline_mode = #tpu.pipeline_mode<synchronous>, transform_indices = @transform_1, window_bounds = array<i64: 128, 128>}, {pipeline_mode = #tpu.pipeline_mode<synchronous>, transform_indices = @transform_2, window_bounds = array<i64: 1, 128>}, {pipeline_mode = #tpu.pipeline_mode<synchronous>, transform_indices = @transform_3, window_bounds = array<i64: 128, 128>}, {pipeline_mode = #tpu.pipeline_mode<synchronous>, transform_indices = @transform_4, window_bounds = array<i64: 1, 128>}, {transform_indices = @transform_5, window_bounds = array<i64: 8, 128>}]} {
    %c0 = arith.constant 0 : index
    %c0_0 = arith.constant 0 : index
    %0 = vector.load %arg1[%c0, %c0_0] : memref<8x128xf32, #tpu.memory_space<vmem>>, vector<8x128xf32>
    %c0_1 = arith.constant 0 : index
    %c0_2 = arith.constant 0 : index
    %1 = vector.load %arg2[%c0_1, %c0_2] : memref<128x128xf32, #tpu.memory_space<vmem>>, vector<128x128xf32>
    %cst = arith.constant dense<0.000000e+00> : vector<8x128xf32>
    %2 = tpu.matmul %0, %1, %cst {dimension_numbers = #tpu.dot_dimension_numbers<[1], [0], [0], [1], [0, 0, 1, 1], [], []>} : vector<8x128xf32>, vector<128x128xf32>, vector<8x128xf32> -> vector<8x128xf32>
    %c0_3 = arith.constant 0 : index
    %c0_4 = arith.constant 0 : index
    %3 = vector.load %arg3[%c0_3, %c0_4] : memref<1x128xf32, #tpu.memory_space<vmem>>, vector<1x128xf32>
    %4 = vector.broadcast %3 : vector<1x128xf32> to vector<8x128xf32>
    %5 = arith.addf %2, %4 : vector<8x128xf32>
    %cst_5 = arith.constant 0.000000e+00 : f32
    %6 = vector.broadcast %cst_5 : f32 to vector<8x128xf32>
    %7 = arith.maximumf %5, %6 : vector<8x128xf32>
    %c0_6 = arith.constant 0 : index
    %c0_7 = arith.constant 0 : index
    %8 = vector.load %arg4[%c0_6, %c0_7] : memref<128x128xf32, #tpu.memory_space<vmem>>, vector<128x128xf32>
    %cst_8 = arith.constant dense<0.000000e+00> : vector<8x128xf32>
    %9 = tpu.matmul %7, %8, %cst_8 {dimension_numbers = #tpu.dot_dimension_numbers<[1], [0], [0], [1], [0, 0, 1, 1], [], []>} : vector<8x128xf32>, vector<128x128xf32>, vector<8x128xf32> -> vector<8x128xf32>
    %c0_9 = arith.constant 0 : index
    %c0_10 = arith.constant 0 : index
    %10 = vector.load %arg5[%c0_9, %c0_10] : memref<1x128xf32, #tpu.memory_space<vmem>>, vector<1x128xf32>
    %11 = vector.broadcast %10 : vector<1x128xf32> to vector<8x128xf32>
    %12 = arith.addf %9, %11 : vector<8x128xf32>
    %cst_11 = arith.constant 0.000000e+00 : f32
    %13 = vector.broadcast %cst_11 : f32 to vector<8x128xf32>
    %14 = arith.maximumf %12, %13 : vector<8x128xf32>
    %c0_12 = arith.constant 0 : index
    %c0_13 = arith.constant 0 : index
    %15 = vector.load %arg6[%c0_12, %c0_13] : memref<8x128xf32, #tpu.memory_space<vmem>>, vector<8x128xf32>
    tpu.vector_store %arg6[%c0_12, %c0_13], %14 {strides = array<i32>} : memref<8x128xf32, #tpu.memory_space<vmem>>, vector<8x128xf32>,
    return
  }
  func.func @transform_0(%arg0: i32) -> (i32, i32) {
    %c0_i32 = arith.constant 0 : i32
    %c0_i32_0 = arith.constant 0 : i32
    return %arg0, %c0_i32 : i32, i32
  }
  func.func @transform_1(%arg0: i32) -> (i32, i32) {
    %c0_i32 = arith.constant 0 : i32
    %c0_i32_0 = arith.constant 0 : i32
    %c0_i32_1 = arith.constant 0 : i32
    return %c0_i32, %c0_i32_0 : i32, i32
  }
  func.func @transform_2(%arg0: i32) -> (i32, i32) {
    %c0_i32 = arith.constant 0 : i32
    %c0_i32_0 = arith.constant 0 : i32
    %c0_i32_1 = arith.constant 0 : i32
    return %c0_i32, %c0_i32_0 : i32, i32
  }
  func.func @transform_3(%arg0: i32) -> (i32, i32) {
    %c0_i32 = arith.constant 0 : i32
    %c0_i32_0 = arith.constant 0 : i32
    %c0_i32_1 = arith.constant 0 : i32
    return %c0_i32, %c0_i32_0 : i32, i32
  }
  func.func @transform_4(%arg0: i32) -> (i32, i32) {
    %c0_i32 = arith.constant 0 : i32
    %c0_i32_0 = arith.constant 0 : i32
    %c0_i32_1 = arith.constant 0 : i32
    return %c0_i32, %c0_i32_0 : i32, i32
  }
  func.func @transform_5(%arg0: i32) -> (i32, i32) {
    %c0_i32 = arith.constant 0 : i32
    %c0_i32_0 = arith.constant 0 : i32
    return %arg0, %c0_i32 : i32, i32
  }
}

</mosaic_0001>

<bundles_post_ra>
// kernel: fcnet_forward_prepared.1
= control target key start
LH: loop header
LB: loop body
LE: loop exit
PB: predicated region body
PF: predicated region fallthrough
CT: control target
= control target key end

     0   :  { %10 = vsyncpa [#allocation3], 0  ;;  %s1046_s0 = inlined_call_operand.vmem [shape: f32[16,128], index: 0, kind: input, shape index: {}]   ;;  %s1047_s1 = inlined_call_operand.hbm [shape: f32[128,128], index: 1, kind: input, shape index: {}]   ;;  %s1048_s2 = inlined_call_operand.vmem [shape: f32[1,128], index: 2, kind: input, shape index: {}]   ;;  %s1049_s3 = inlined_call_operand.hbm [shape: f32[128,128], index: 3, kind: input, shape index: {}]   ;;  %s1050_s4 = inlined_call_operand.vmem [shape: f32[1,128], index: 4, kind: input, shape index: {}]   ;;  %s1051_s5 = inlined_call_operand.hbm [shape: f32[16,128], index: 5, kind: output, shape index: {}]  }
   0x1   :  { %11 = vsyncpa [#allocation6], 0 }
   0x2   :  { %12 = vsyncpa [#allocation4], 0 }
   0x3   :  { %14 = vsyncpa [#allocation4 + $0x1], 0  ;;  %s878_s18 = smov 0   ;;  %s880_s19 = smov 0  }
   0x4   :  { %s882_s20 = smov 0   ;;  %s884_s21 = smov 0  }
   0x5 LB: > { %s899_s22 = sadd.s32 4294967295, %s839_s21   ;;  %s535_s23 = sadd.s32 4294967294, %s839_s21   ;;  %s839_s21 = sphi %s884_s21, %s1065_s21   ;;  %s835_s20 = sphi %s882_s20, %s1064_s20   ;;  %s831_s19 = sphi %s880_s19, %s1063_s19   ;;  %s827_s18 = sphi %s878_s18, %s1062_s18  }
   0x6   : > { %s903_s24 = sadd.s32 1, %s839_s21   ;;  %s137_s25 = sadd.s32 1, %s835_s20 }
   0x7   : > { %s134_s26 = ssub.s32 %s839_s21, %s903_s24  ;;  %p147_p0 = scmp.ne.s32.totalorder %s835_s20, %s831_s19 }
   0x8   : > { %p135_p1 = scmp.eq.s32.totalorder %s134_s26, 0  ;;  %p148_p2 = scmp.eq.s32.totalorder %s899_s22, 1 }
   0x9   : > { %p153_p3 = scmp.ne.s32.totalorder %s831_s19, %s827_s18  ;;  %p154_p4 = scmp.eq.s32.totalorder %s535_s23, 1 }
   0xa   : > { %s914_s27 = scalar_select %p135_p1, %s835_s20, %s137_s25  }
   0xb   : > { %p916_p5 = por %p148_p2, %p147_p0  ;;  %p920_p6 = por %p154_p4, %p153_p3 }
   0xc   : > { %p536_p7 = scmp.ge.s32.totalorder %s839_s21, 1  ;;  %p161_p8 = scmp.lt.s32.totalorder %s839_s21, 3 }
   0xd   : > { %s1054_s29 = scalar_select %p920_p6, 1, 0 }
   0xe   : > { %p1052_p9 = scmp.eq.s32.totalorder %s899_s22, 0  ;;  %p927_p10 = pnand %p536_p7, %p161_p8 }
   0xf   : > { %s841_s6 = smov [#allocation2]   ;;  %s842_s9 = smov [#allocation5]  }
  0x10   : > { %s173_s7 = sshll.u32 %s841_s6, 4  ;;  %p665_p11 = pneg %p927_p10  ;;  %s174_s7 = int_to_ptr.vmem [resolvable:$true] %s173_s7 }
  0x11   : > { %s189_s10 = sshll.u32 %s842_s9, 4  ;;  %s730_s11 = scalar_lea.vmem %s174_s7, 2048  ;;  %s190_s10 = int_to_ptr.vmem [resolvable:$true] %s189_s10 }
  0x12   : > { %p935_p12 = pnand %p1052_p9, %p665_p11  ;;  %p731_p0 = scmp.ne.s32.totalorder %s174_s7, %s730_s11 }
  0x13   : > { %p738_p3 = scmp.lt.s32.totalorder %s174_s7, %s174_s7  ;;  %p739_p4 = scmp.lt.s32.totalorder %s730_s11, %s730_s11 }
  0x14   : > { %p721_p13 = pneg %p935_p12 }
  0x15   : > { %p740_p7 = por %p739_p4, %p738_p3 }
  0x16   : > { %p733_p1 = pnand %p731_p0, %p721_p13 }
  0x18   : > { %p734_p2 = pneg %p733_p1 }
  0x1a   : > { %p741_p8 = pnand %p740_p7, %p734_p2 }
  0x1c   : > { %744 = shalt.err (!%p741_p8)
}
  0x1d   : > { %s843_s12 = smov 128   ;;  %s844_s13 = smov 8  }
  0x1e   : > { %668 = dma.hbm_to_vmem [thread:$0]  (!%p935_p12), %s1047_s1, 2048, %s174_s7, [#allocation3], %s843_s12, %s843_s12, %s844_s13  }
  0x1f   : > { %s756_s16 = scalar_lea.vmem %s190_s10, 2048  ;;  %p764_p9 = scmp.lt.s32.totalorder %s190_s10, %s190_s10 }
  0x20   : > { %p757_p11 = scmp.ne.s32.totalorder %s190_s10, %s756_s16  ;;  %p765_p6 = scmp.lt.s32.totalorder %s756_s16, %s756_s16 }
  0x22   : > { %p759_p0 = pnand %p757_p11, %p721_p13  ;;  %p766_p3 = por %p765_p6, %p764_p9 }
  0x24   : > { %p760_p1 = pneg %p759_p0 }
  0x26   : > { %p767_p2 = pnand %p766_p3, %p760_p1 }
  0x28   : > { %770 = shalt.err (!%p767_p2)
}
  0x29   : > { %671 = dma.hbm_to_vmem [thread:$0]  (!%p935_p12), %s1049_s3, 2048, %s190_s10, [#allocation6], %s843_s12, %s843_s12, %s844_s13  }
  0x2a   : > { %215 = sbr.rel (%p927_p10) target bundleno = 492 (0x1ec), region = 40  ;;  %p1057_p4 = scmp.eq.s32.totalorder (!%p927_p10), %s899_s22, 0 }
  0x2f   : > { %814 = dma.done.wait (%p1057_p4), [#allocation3], 2048   ;;  %p1058_p13 = pmov %p1057_p4 }
  0x30   : > { %p1059_p7 = pmov %p1057_p4 }
  0x31   : > { %816 = vsyncadd (%p1058_p13), [#allocation3], 4294965248 }
  0x32   : > { %818 = dma.done.wait (%p1059_p7), [#allocation6], 2048   ;;  %p1060_p6 = pmov %p1057_p4 }
  0x33   : > { %v845_v0 = vmov 0.0   ;;  %vm846_vm0 = vmmov 0   ;;  %v266_v1 = vld [vmem:[#allocation2 + $0x78] sm:$0xff]  ;;  %v265_v2 = vld [vmem:[#allocation2 + $0x70] sm:$0xff]  ;;  %v264_v3 = vld [vmem:[#allocation2 + $0x68] sm:$0xff]  ;;  %p246_p9 = scmp.lt.s32.totalorder %s899_s22, 1 }
  0x34   : > { %820 = vsyncadd (%p1060_p6), [#allocation6], 4294965248  ;;  %585 = vmatprep.subr.mxu0 %v845_v0  ;;  %617 = vmatprep.mubr.msk.f32.mxu0 %vm846_vm0, %v845_v0  ;;  %v263_v4 = vld [vmem:[#allocation2 + $0x60] sm:$0xff]  ;;  %v360_v5 = vld [vmem:[#allocation5 + $0x78] sm:$0xff]  ;;  %s243_s10 = sand.u32 1, %s831_s19   ;;  %s548_s14 = sshll.u32 %s899_s22, 7 }
  0x35   : > { %620 = vmatprep.subr.mxu1 %v845_v0  ;;  %652 = vmatprep.mubr.msk.f32.mxu1 %vm846_vm0, %v845_v0  ;;  %v262_v6 = vld [vmem:[#allocation2 + $0x58] sm:$0xff]  ;;  %v359_v7 = vld [vmem:[#allocation5 + $0x70] sm:$0xff]  ;;  %v358_v8 = vld [vmem:[#allocation5 + $0x68] sm:$0xff]  ;;  %s247_s25 = scalar_select %p246_p9, %s899_s22, 1 }
  0x36   : > { %586 = vmatpush3.msra.mxu0 %v266_v1  ;;  %621 = vmatpush3.msra.mxu1 %v360_v5  ;;  %v261_v9 = vld [vmem:[#allocation2 + $0x50] sm:$0xff]  ;;  %v357_v10 = vld [vmem:[#allocation5 + $0x60] sm:$0xff]  ;;  %v260_v11 = vld [vmem:[#allocation2 + $0x48] sm:$0xff]  ;;  %s543_s11 = sshll.u32 %s243_s10, 3  ;;  %s847_s6 = smov [#allocation7]  }
  0x37   : > { %587 = vmatprep.subr.mxu0 %v845_v0  ;;  %622 = vmatprep.subr.mxu1 %v845_v0  ;;  %v356_v12 = vld [vmem:[#allocation5 + $0x58] sm:$0xff]  ;;  %v259_v13 = vld [vmem:[#allocation2 + $0x40] sm:$0xff]  ;;  %v355_v14 = vld [vmem:[#allocation5 + $0x50] sm:$0xff]  ;;  %s544_s26 = sshll.u32 %s247_s25, 3  ;;  %s245_s15 = scalar_lea.vmem [#allocation7], %s543_s11 }
  0x38   : > { %588 = vmatpush3.msra.mxu0 %v265_v2  ;;  %623 = vmatpush3.msra.mxu1 %v359_v7  ;;  %v258_v15 = vld [vmem:[#allocation2 + $0x38] sm:$0xff]  ;;  %v354_v16 = vld [vmem:[#allocation5 + $0x48] sm:$0xff]  ;;  %v257_v17 = vld [vmem:[#allocation2 + $0x30] sm:$0xff]  ;;  %s249_s7 = scalar_lea.vmem %s1046_s0, %s544_s26  ;;  %s454_s16 = sshll.u32 %s245_s15, 4  ;;  %s455_s16 = int_to_ptr.vmem [resolvable:$true] %s454_s16 }
  0x39   : > { %589 = vmatprep.subr.mxu0 %v845_v0  ;;  %624 = vmatprep.subr.mxu1 %v845_v0  ;;  %v353_v18 = vld [vmem:[#allocation5 + $0x40] sm:$0xff]  ;;  %v256_v19 = vld [vmem:[#allocation2 + $0x28] sm:$0xff]  ;;  %v352_v20 = vld [vmem:[#allocation5 + $0x38] sm:$0xff]  ;;  %s452_s25 = scalar_lea.hbm %s1051_s5, %s548_s14  ;;  %s441_s26 = scalar_lea.sflag [#allocation4], %s243_s10 }
  0x3a   : > { %590 = vmatpush3.msra.mxu0 %v264_v3  ;;  %625 = vmatpush3.msra.mxu1 %v358_v8  ;;  %v255_v21 = vld [vmem:[#allocation2 + $0x20] sm:$0xff]  ;;  %v351_v22 = vld [vmem:[#allocation5 + $0x30] sm:$0xff]  ;;  %v254_v23 = vld [vmem:[#allocation2 + $0x18] sm:$0xff]  ;;  %s771_s30 = scalar_lea.vmem %s455_s16, 128 }
  0x3b   : > { %591 = vmatprep.subr.mxu0 %v845_v0  ;;  %626 = vmatprep.subr.mxu1 %v845_v0  ;;  %v350_v24 = vld [vmem:[#allocation5 + $0x28] sm:$0xff]  ;;  %v253_v25 = vld [vmem:[#allocation2 + $0x10] sm:$0xff]  ;;  %v349_v26 = vld [vmem:[#allocation5 + $0x20] sm:$0xff]  ;;  %p772_p10 = scmp.ne.s32.totalorder %s455_s16, %s771_s30 }
  0x3c   : > { %592 = vmatpush3.msra.mxu0 %v263_v4  ;;  %627 = vmatpush3.msra.mxu1 %v357_v10  ;;  %v252_v27 = vld [vmem:[#allocation2 + $0x8] sm:$0xff]  ;;  %v348_v28 = vld [vmem:[#allocation5 + $0x18] sm:$0xff]  ;;  %v251_v29 = vld [vmem:[#allocation2] sm:$0xff] }
  0x3d   : > { %593 = vmatprep.subr.mxu0 %v845_v0  ;;  %628 = vmatprep.subr.mxu1 %v845_v0  ;;  %v250_v30 = vld [vmem:[%s249_s7] sm:$0xff]  ;;  %v347_v31 = vld [vmem:[#allocation5 + $0x10] sm:$0xff]  ;;  %v346_v32 = vld [vmem:[#allocation5 + $0x8] sm:$0xff]  ;;  %p773_p12 = pnand %p772_p10, %p916_p5  ;;  %s775_s7 = sshll.u32 %s847_s6, 4  ;;  %s776_s7 = int_to_ptr.vmem [resolvable:$false] %s775_s7 }
  0x3e   : > { %594 = vmatpush3.msra.mxu0 %v262_v6  ;;  %629 = vmatpush3.msra.mxu1 %v356_v12  ;;  %v345_v33 = vld [vmem:[#allocation5] sm:$0xff]  ;;  %s777_s22 = scalar_lea.vmem %s776_s7, 256  ;;  %p778_p11 = scmp.lt.s32.totalorder %s455_s16, %s776_s7 }
  0x3f   : > { %595 = vmatprep.subr.mxu0 %v845_v0  ;;  %630 = vmatprep.subr.mxu1 %v845_v0  ;;  %v545_v34 = vld [vmem:[%s1048_s2] ss:$0 sm:$0xff]  ;;  %p774_p8 = pneg %p773_p12  ;;  %p779_p0 = scmp.lt.s32.totalorder %s777_s22, %s771_s30 }
  0x40   : > { %596 = vmatpush3.msra.mxu0 %v261_v9  ;;  %631 = vmatpush3.msra.mxu1 %v355_v14  ;;  %v546_v39 = vld [vmem:[%s1050_s4] ss:$0 sm:$0xff] }
  0x41   : > { %597 = vmatprep.subr.mxu0 %v845_v0  ;;  %632 = vmatprep.subr.mxu1 %v845_v0  ;;  %p780_p1 = por %p779_p0, %p778_p11 }
  0x42   : > { %598 = vmatpush3.msra.mxu0 %v260_v11  ;;  %633 = vmatpush3.msra.mxu1 %v354_v16 }
  0x43   : > { %599 = vmatprep.subr.mxu0 %v845_v0  ;;  %634 = vmatprep.subr.mxu1 %v845_v0  ;;  %p781_p3 = pnand %p780_p1, %p774_p8 }
  0x44   : > { %600 = vmatpush3.msra.mxu0 %v259_v13  ;;  %635 = vmatpush3.msra.mxu1 %v353_v18 }
  0x45   : > { %601 = vmatprep.subr.mxu0 %v845_v0  ;;  %636 = vmatprep.subr.mxu1 %v845_v0 }
  0x46   : > { %602 = vmatpush3.msra.mxu0 %v258_v15  ;;  %637 = vmatpush3.msra.mxu1 %v352_v20 }
  0x47   : > { %603 = vmatprep.subr.mxu0 %v845_v0  ;;  %638 = vmatprep.subr.mxu1 %v845_v0 }
  0x48   : > { %604 = vmatpush3.msra.mxu0 %v257_v17  ;;  %639 = vmatpush3.msra.mxu1 %v351_v22 }
  0x49   : > { %605 = vmatprep.subr.mxu0 %v845_v0  ;;  %640 = vmatprep.subr.mxu1 %v845_v0 }
  0x4a   : > { %606 = vmatpush3.msra.mxu0 %v256_v19  ;;  %641 = vmatpush3.msra.mxu1 %v350_v24 }
  0x4b   : > { %607 = vmatprep.subr.mxu0 %v845_v0  ;;  %642 = vmatprep.subr.mxu1 %v845_v0 }
  0x4c   : > { %608 = vmatpush3.msra.mxu0 %v255_v21  ;;  %643 = vmatpush3.msra.mxu1 %v349_v26 }
  0x4d   : > { %609 = vmatprep.subr.mxu0 %v845_v0  ;;  %644 = vmatprep.subr.mxu1 %v845_v0 }
  0x4e   : > { %610 = vmatpush3.msra.mxu0 %v254_v23  ;;  %645 = vmatpush3.msra.mxu1 %v348_v28 }
  0x4f   : > { %611 = vmatprep.subr.mxu0 %v845_v0  ;;  %646 = vmatprep.subr.mxu1 %v845_v0 }
  0x50   : > { %612 = vmatpush3.msra.mxu0 %v253_v25  ;;  %647 = vmatpush3.msra.mxu1 %v347_v31 }
  0x51   : > { %613 = vmatprep.subr.mxu0 %v845_v0  ;;  %648 = vmatprep.subr.mxu1 %v845_v0 }
  0x52   : > { %614 = vmatpush3.msra.mxu0 %v252_v27  ;;  %649 = vmatpush3.msra.mxu1 %v346_v32 }
  0x53   : > { %615 = vmatprep.subr.mxu0 %v845_v0  ;;  %650 = vmatprep.subr.mxu1 %v845_v0 }
  0x54   : > { %616 = vmatpush3.msra.mxu0 %v251_v29  ;;  %651 = vmatpush3.msra.mxu1 %v345_v33 }
  0x55   : > { %618 = vmatmul.mubr.f32.vlgmr.msra.gmra.mxu0 %v250_v30 }
 0x115   : > { %v340_v35 = vpop.f32.mrf.mxu0 }
 0x116   : > { %v341_v36 = vadd.f32 %v545_v34, %v340_v35 }
 0x117   : > { %v619_v37 = vpop.f32.mrf.mxu0 }
 0x118   : > { %v344_v38 = vmax.f32 %v341_v36, 0.0 }
 0x11a   : > { %653 = vmatmul.mubr.f32.vlgmr.msra.gmra.mxu1 %v344_v38 }
 0x1da   : > { %v434_v40 = vpop.f32.mrf.mxu1 }
 0x1db   : > { %v435_v41 = vadd.f32 %v546_v39, %v434_v40 }
 0x1dc   : > { %v654_v42 = vpop.f32.mrf.mxu1 }
 0x1dd   : > { %v438_v43 = vmax.f32 %v435_v41, 0.0 }
 0x1df   : > { %439 = vst [vmem:[%s245_s15] sm:$0xff] %v438_v43 }
 0x1e0   : > { %784 = shalt.err (!%p781_p3)
}
 0x1e1   : > { %s785_s8 = scalar_lea.hbm %s452_s25, 128  ;;  %s789_s11 = scalar_lea.hbm %s1051_s5, 256 }
 0x1e2   : > { %p786_p2 = scmp.ne.s32.totalorder %s452_s25, %s785_s8  ;;  %p790_p7 = scmp.lt.s32.totalorder %s452_s25, %s1051_s5 }
 0x1e3   : > { %p791_p6 = scmp.lt.s32.totalorder %s789_s11, %s785_s8 }
 0x1e4   : > { %p787_p4 = pnand %p786_p2, %p916_p5 }
 0x1e5   : > { %p792_p9 = por %p791_p6, %p790_p7 }
 0x1e6   : > { %p788_p13 = pneg %p787_p4 }
 0x1e8   : > { %p793_p10 = pnand %p792_p9, %p788_p13 }
 0x1ea   : > { %796 = shalt.err (!%p793_p10)
}
 0x1eb   : > { %663 = dma.vmem_to_hbm [thread:$0]  (%p916_p5), %s455_s16, 128, %s452_s25, %s441_s26  }
 0x1ec PF: > { %p680_p12 = scmp.ge.s32.totalorder %s839_s21, 2  ;;  %s466_s14 = sand.u32 1, %s827_s18  }
 0x1ed   : > { %p1061_p8 = scmp.ne.s32.totalorder %s1054_s29, 0  ;;  %s467_s15 = scalar_lea.sflag [#allocation4], %s466_s14 }
 0x1ef   : > { %p673_p11 = pnand %p680_p12, %p1061_p8 }
 0x1f1   : > { %p674_p0 = pneg %p673_p11 }
 0x1f3   : > { %822 = dma.done.wait (%p674_p0), %s467_s15, 128  }
 0x1f4   : > { %824 = vsyncadd (%p674_p0), %s467_s15, 4294967168  ;;  %p17_p1 = scmp.ge.s32.totalorder %s903_s24, 4   ;;  %s1062_s18 = smov %s831_s19 }
 0x1f5   : > { %s1063_s19 = smov %s835_s20  ;;  %s1064_s20 = smov %s914_s27 }
 0x1f6   : > { %s1065_s21 = smov %s903_s24  ;;  %19 = sbr.rel (!%p17_p1) target bundleno = 5 (0x5), region = 84 }
 0x1fb   :  { %472 = vsyncpa [#allocation3], 1 }
 0x1fc   :  { %474 = vsyncpa [#allocation3 + $0x1], 1 }
 0x1fd   :  { %475 = vsyncpa [#allocation6], 1 }
 0x1fe   :  { %476 = vsyncpa [#allocation4], 1 }
 0x1ff   :  { %478 = vsyncpa [#allocation4 + $0x1], 1 }

</bundles_post_ra>
